<compile_context>
chip_gen: v5e
topology: v5e:2x2
jax: 0.10.0
libtpu: 0.0.40
codegen_flags: <defaults>
</compile_context>

<pallas_src>
import jax
import jax.numpy as jnp
from jax import lax
from jax.experimental import pallas as pl
from jax.experimental.pallas import tpu as pltpu

EPS = 1e-5


def _batchnorm_kernel(x_ref, gamma_ref, beta_ref, o_ref):
    # x_ref / o_ref: (N, TC, HW)   gamma_ref / beta_ref: (TC, 1) float32
    n = x_ref.shape[0]
    hw = x_ref.shape[2]
    inv_n = 1.0 / float(n * hw)

    # Sweep 1: per-channel mean over (N, H*W).
    s = jnp.sum(x_ref[...].astype(jnp.float32), axis=0)            # (TC, HW)
    mean = jnp.sum(s, axis=-1, keepdims=True) * inv_n               # (TC, 1)

    # Sweep 2: centered, biased variance (BatchNorm training semantics).
    xc = x_ref[...].astype(jnp.float32) - mean                      # (N, TC, HW)
    ss = jnp.sum(jnp.sum(xc * xc, axis=0), axis=-1, keepdims=True)  # (TC, 1)
    var = ss * inv_n
    inv = lax.rsqrt(var + EPS)                                      # (TC, 1)

    # Fused affine:  y = x * scale + shift   (gamma/beta kept in fp32).
    g = gamma_ref[...]                                              # (TC, 1) f32
    b = beta_ref[...]                                               # (TC, 1) f32
    scale = inv * g                                                 # (TC, 1)
    shift = b - mean * scale                                        # (TC, 1)

    # Sweep 3: normalize + write (lane-dense store over the full HW axis).
    o_ref[...] = (x_ref[...].astype(jnp.float32) * scale + shift).astype(o_ref.dtype)


def _choose_channel_tile(N, C, HW, itemsize, vmem_limit_bytes):
    """Pick a channel-tile size that fits the (generation-dependent) VMEM budget."""
    # fp32 working set dominates inside the kernel regardless of input dtype.
    per_channel_bytes = N * HW * max(itemsize, 4)
    # ~2 input bufs + 2 output bufs (double-buffered) + fp32 temporaries:
    # budget roughly 1/8 of the scoped VMEM limit per channel-tile buffer.
    budget = max(per_channel_bytes, vmem_limit_bytes // 8)
    tc = int(budget // per_channel_bytes)
    if tc >= C:
        return C
    # When the tile does not cover all channels, the sublane dim of the block
    # must be a multiple of 8 (TPU (8,128) tiling constraint).
    return max(8, (tc // 8) * 8)


def double_norm(x, mask, gamma, beta):
    """DoubleNorm.forward((x, mask)) with norm = BatchNorm2d (batch statistics)."""
    N, C, H, W = x.shape
    HW = H * W

    # Free reshapes only — no transposes, no extra HBM traffic.
    xr = x.reshape(N, C, HW)
    g = gamma.reshape(C, 1).astype(jnp.float32)
    b = beta.reshape(C, 1).astype(jnp.float32)

    # Generation-aware VMEM budget (v5e/v6e: 128 MiB physical, v7x: 64 MiB/TC).
    try:
        vmem_capacity = int(pltpu.get_tpu_info().vmem_capacity_bytes)
    except Exception:
        vmem_capacity = 64 << 20  # conservative fallback (v7x per-TC)
    vmem_limit = int(min(vmem_capacity // 2, 64 << 20))

    tc = _choose_channel_tile(N, C, HW, x.dtype.itemsize, vmem_limit)
    grid = (pl.cdiv(C, tc),)

    out = pl.pallas_call(
        _batchnorm_kernel,
        out_shape=jax.ShapeDtypeStruct((N, C, HW), x.dtype),
        grid_spec=pltpu.PrefetchScalarGridSpec(
            num_scalar_prefetch=0,
            grid=grid,
            in_specs=[
                pl.BlockSpec((N, tc, HW), lambda c: (0, c, 0)),
                pl.BlockSpec((tc, 1), lambda c: (c, 0)),
                pl.BlockSpec((tc, 1), lambda c: (c, 0)),
            ],
            out_specs=pl.BlockSpec((N, tc, HW), lambda c: (0, c, 0)),
        ),
        compiler_params=pltpu.CompilerParams(
            dimension_semantics=("parallel",),   # shard channel tiles across TCs (v7x)
            vmem_limit_bytes=vmem_limit,
        ),
    )(xr, g, b)

    y = out.reshape(N, C, H, W)   # free reshape back to NCHW
    return y, mask                 # mask passes through untouched


def _reference(x, mask, gamma, beta):
    # Pure-JAX reference of BatchNorm2d training-mode forward (NCHW).
    mean = jnp.mean(x, axis=(0, 2, 3), keepdims=True)
    var = jnp.mean((x - mean) ** 2, axis=(0, 2, 3), keepdims=True)
    y = (x - mean) / jnp.sqrt(var + EPS)
    y = y * gamma.reshape(1, -1, 1, 1) + beta.reshape(1, -1, 1, 1)
    return y, mask


if __name__ == "__main__":
    key = jax.random.PRNGKey(0)
    kx, km, kg, kb = jax.random.split(key, 4)

    N, C, H, W = 2, 4, 16, 16
    x = jax.random.normal(kx, (N, C, H, W), dtype=jnp.float32)
    mask = (jax.random.uniform(km, (N, C, H, W)) > 0.5).astype(jnp.float32)
    # PyTorch default is gamma=1, beta=0; use non-trivial deterministic values
    # to exercise the affine path.
    gamma = 1.0 + 0.1 * jax.random.normal(kg, (C,), dtype=jnp.float32)
    beta = 0.1 * jax.random.normal(kb, (C,), dtype=jnp.float32)

    y, m_out = double_norm(x, mask, gamma, beta)
    y = jax.block_until_ready(y)
    m_out = jax.block_until_ready(m_out)

    y_ref, m_ref = _reference(x, mask, gamma, beta)
    assert jnp.allclose(y, y_ref, atol=1e-4, rtol=1e-4), "norm(x) mismatch"
    assert jnp.array_equal(m_out, m_ref), "mask must pass through unchanged"

    print("KERNEL_OK")
</pallas_src>

<mosaic_0001>
module attributes {stable_mosaic.version = 11 : i64} {
  func.func @_batchnorm_kernel(%arg0: i32, %arg1: memref<2x4x256xf32, #tpu.memory_space<vmem>>, %arg2: memref<4x1xf32, #tpu.memory_space<vmem>>, %arg3: memref<4x1xf32, #tpu.memory_space<vmem>>, %arg4: memref<2x4x256xf32, #tpu.memory_space<vmem>>) attributes {dimension_semantics = [#tpu.dimension_semantics<parallel>], iteration_bounds = array<i64: 1>, scalar_prefetch = 0 : i64, scratch_operands = 0 : i64, tpu.core_type = #tpu.core_type<tc>, window_params = [{transform_indices = @transform_0, window_bounds = array<i64: 2, 4, 256>}, {transform_indices = @transform_1, window_bounds = array<i64: 4, 1>}, {transform_indices = @transform_2, window_bounds = array<i64: 4, 1>}, {transform_indices = @transform_3, window_bounds = array<i64: 2, 4, 256>}]} {
    %c0 = arith.constant 0 : index
    %c0_0 = arith.constant 0 : index
    %c0_1 = arith.constant 0 : index
    %0 = vector.load %arg1[%c0, %c0_0, %c0_1] : memref<2x4x256xf32, #tpu.memory_space<vmem>>, vector<2x4x256xf32>
    %cst = arith.constant dense<0.000000e+00> : vector<4x256xf32>
    %1 = vector.multi_reduction <add>, %0, %cst [0] : vector<2x4x256xf32> to vector<4x256xf32>
    %cst_2 = arith.constant dense<0.000000e+00> : vector<4xf32>
    %2 = vector.multi_reduction <add>, %1, %cst_2 [1] : vector<4x256xf32> to vector<4xf32>
    %3 = vector.shape_cast %2 : vector<4xf32> to vector<4x1xf32>
    %cst_3 = arith.constant 0.001953125 : f32
    %4 = vector.broadcast %cst_3 : f32 to vector<4x1xf32>
    %5 = arith.mulf %3, %4 : vector<4x1xf32>
    %c0_4 = arith.constant 0 : index
    %c0_5 = arith.constant 0 : index
    %c0_6 = arith.constant 0 : index
    %6 = vector.load %arg1[%c0_4, %c0_5, %c0_6] : memref<2x4x256xf32, #tpu.memory_space<vmem>>, vector<2x4x256xf32>
    %7 = vector.shape_cast %5 : vector<4x1xf32> to vector<1x4x1xf32>
    %8 = vector.broadcast %7 : vector<1x4x1xf32> to vector<2x4x256xf32>
    %9 = arith.subf %6, %8 : vector<2x4x256xf32>
    %10 = arith.mulf %9, %9 : vector<2x4x256xf32>
    %cst_7 = arith.constant dense<0.000000e+00> : vector<4x256xf32>
    %11 = vector.multi_reduction <add>, %10, %cst_7 [0] : vector<2x4x256xf32> to vector<4x256xf32>
    %cst_8 = arith.constant dense<0.000000e+00> : vector<4xf32>
    %12 = vector.multi_reduction <add>, %11, %cst_8 [1] : vector<4x256xf32> to vector<4xf32>
    %13 = vector.shape_cast %12 : vector<4xf32> to vector<4x1xf32>
    %cst_9 = arith.constant 0.001953125 : f32
    %14 = vector.broadcast %cst_9 : f32 to vector<4x1xf32>
    %15 = arith.mulf %13, %14 : vector<4x1xf32>
    %cst_10 = arith.constant 9.99999974E-6 : f32
    %16 = vector.broadcast %cst_10 : f32 to vector<4x1xf32>
    %17 = arith.addf %15, %16 : vector<4x1xf32>
    %18 = math.rsqrt %17 : vector<4x1xf32>
    %c0_11 = arith.constant 0 : index
    %c0_12 = arith.constant 0 : index
    %19 = vector.load %arg2[%c0_11, %c0_12] : memref<4x1xf32, #tpu.memory_space<vmem>>, vector<4x1xf32>
    %c0_13 = arith.constant 0 : index
    %c0_14 = arith.constant 0 : index
    %20 = vector.load %arg3[%c0_13, %c0_14] : memref<4x1xf32, #tpu.memory_space<vmem>>, vector<4x1xf32>
    %21 = arith.mulf %18, %19 : vector<4x1xf32>
    %22 = arith.mulf %5, %21 : vector<4x1xf32>
    %23 = arith.subf %20, %22 : vector<4x1xf32>
    %c0_15 = arith.constant 0 : index
    %c0_16 = arith.constant 0 : index
    %c0_17 = arith.constant 0 : index
    %24 = vector.load %arg1[%c0_15, %c0_16, %c0_17] : memref<2x4x256xf32, #tpu.memory_space<vmem>>, vector<2x4x256xf32>
    %25 = vector.shape_cast %21 : vector<4x1xf32> to vector<1x4x1xf32>
    %26 = vector.broadcast %25 : vector<1x4x1xf32> to vector<2x4x256xf32>
    %27 = arith.mulf %24, %26 : vector<2x4x256xf32>
    %28 = vector.shape_cast %23 : vector<4x1xf32> to vector<1x4x1xf32>
    %29 = vector.broadcast %28 : vector<1x4x1xf32> to vector<2x4x256xf32>
    %30 = arith.addf %27, %29 : vector<2x4x256xf32>
    %c0_18 = arith.constant 0 : index
    %c0_19 = arith.constant 0 : index
    %c0_20 = arith.constant 0 : index
    %31 = vector.load %arg4[%c0_18, %c0_19, %c0_20] : memref<2x4x256xf32, #tpu.memory_space<vmem>>, vector<2x4x256xf32>
    tpu.vector_store %arg4[%c0_18, %c0_19, %c0_20], %30 {strides = array<i32>} : memref<2x4x256xf32, #tpu.memory_space<vmem>>, vector<2x4x256xf32>,
    return
  }
  func.func @transform_0(%arg0: i32) -> (i32, i32, i32) {
    %c0_i32 = arith.constant 0 : i32
    %c0_i32_0 = arith.constant 0 : i32
    %c0_i32_1 = arith.constant 0 : i32
    return %c0_i32, %arg0, %c0_i32_0 : i32, i32, i32
  }
  func.func @transform_1(%arg0: i32) -> (i32, i32) {
    %c0_i32 = arith.constant 0 : i32
    %c0_i32_0 = arith.constant 0 : i32
    return %arg0, %c0_i32 : i32, i32
  }
  func.func @transform_2(%arg0: i32) -> (i32, i32) {
    %c0_i32 = arith.constant 0 : i32
    %c0_i32_0 = arith.constant 0 : i32
    return %arg0, %c0_i32 : i32, i32
  }
  func.func @transform_3(%arg0: i32) -> (i32, i32, i32) {
    %c0_i32 = arith.constant 0 : i32
    %c0_i32_0 = arith.constant 0 : i32
    %c0_i32_1 = arith.constant 0 : i32
    return %c0_i32, %arg0, %c0_i32_0 : i32, i32, i32
  }
}

</mosaic_0001>

<bundles_post_ra>
// kernel: tpu_custom_call.1
= control target key start
LH: loop header
LB: loop body
LE: loop exit
PB: predicated region body
PF: predicated region fallthrough
CT: control target
= control target key end

     0   :  { %8 = vsyncpa [#allocation3], 0  ;;  %s281_s0 = inlined_call_operand.hbm [shape: f32[2,4,256], index: 0, kind: input, shape index: {}]   ;;  %s282_s1 = inlined_call_operand.vmem [shape: f32[4,1], index: 1, kind: input, shape index: {}]   ;;  %s283_s2 = inlined_call_operand.vmem [shape: f32[4,1], index: 2, kind: input, shape index: {}]   ;;  %s284_s3 = inlined_call_operand.hbm [shape: f32[2,4,256], index: 3, kind: output, shape index: {}]  }
   0x1   :  { %9 = vsyncpa [#allocation4], 0  ;;  %s14_s14 = sshll.u32 %s281_s0, 4  ;;  %s215_s15 = smov [#allocation2]   ;;  %s15_s14 = int_to_ptr.hbm [resolvable:$true] %s14_s14 }
   0x2   :  { %s16_s16 = sshll.u32 %s215_s15, 4  ;;  %s216_s17 = smov 128   ;;  %s17_s16 = int_to_ptr.vmem [resolvable:$true] %s16_s16 }
   0x3   :  { %s217_s18 = smov 8  }
   0x4   :  { %22 = dma.hbm_to_vmem [thread:$0]  %s15_s14, 256, %s17_s16, [#allocation3], %s216_s17, %s216_s17, %s217_s18  }
   0x5   :  { %211 = dma.done.wait [#allocation3], 256  }
   0x6   :  { %212 = vsyncadd [#allocation3], 4294967040  ;;  %v247_v0 = vld [vmem:[#allocation2] sm:$0xff]  ;;  %v249_v1 = vld [vmem:[#allocation2 + $0x8] sm:$0xff]  ;;  %vm46_vm0 = vcmask 1043456   ;;  %v219_v38 = vmov 0  }
   0x7   :  { %35 = vst [vmem:[#allocation1] ss:$2 sm:$0xff] %v247_v0  ;;  %v218_v15 = vmov 839922192   ;;  %159 = vset.pattern.permute.xlu1 %v219_v38  ;;  %160 = vset.pattern.permute.xlu0 %v219_v38  ;;  %v105_v48 = vld [vmem:[%s282_s1] sm:$0xf] }
   0x8   :  { %39 = vst [vmem:[#allocation1 + $0x10] ss:$2 sm:$0xff] %v249_v1  ;;  %v61_v16 = vunpack.c.l.s4 %v218_v15  ;;  %v106_v52 = vld [vmem:[%s283_s2] sm:$0xf]  ;;  %s220_s1 = smov [#allocation5]   ;;  %s140_s25 = sshll.u32 %s284_s3, 4  ;;  %s141_s25 = int_to_ptr.hbm [resolvable:$true] %s140_s25 }
   0x9   :  { %s138_s22 = sshll.u32 %s220_s1, 4  ;;  %s139_s22 = int_to_ptr.vmem [resolvable:$true] %s138_s22 }
   0xa   :  { %v62_v17 = vunpack.c.0.s8 %v61_v16 }
   0xe   :  { %v36_v2 = vld.sshfl [vmem:[#allocation1] sm:$0xff pattern:$0x75316420]  ;;  %v37_v3 = vld.sshfl [vmem:[#allocation1 + $0x8] sm:$0xff pattern:$0x75316420] }
   0xf   :  { %v40_v4 = vld.sshfl [vmem:[#allocation1 + $0x10] sm:$0xff pattern:$0x75316420]  ;;  %v41_v5 = vld.sshfl [vmem:[#allocation1 + $0x18] sm:$0xff pattern:$0x75316420] }
  0x10   :  { %v47_v6 = vsel %vm46_vm0, %v36_v2, 0.0  ;;  %v48_v7 = vsel %vm46_vm0, %v40_v4, 0.0  ;;  %v50_v8 = vsel %vm46_vm0, %v37_v3, 0.0  ;;  %v51_v9 = vsel %vm46_vm0, %v41_v5, 0.0 }
  0x11   :  { %v49_v10 = vadd.f32 %v48_v7, %v47_v6  ;;  %v52_v11 = vadd.f32 %v51_v9, %v50_v8 }
  0x13   :  { %v53_v12 = vsel %vm46_vm0, %v49_v10, 0.0  ;;  %v54_v13 = vsel %vm46_vm0, %v52_v11, 0.0 }
  0x14   :  { %v55_v14 = vadd.f32 %v54_v13, %v53_v12 }
  0x16   :  { %56 = vadd.xlane.f32.xlu0 %v55_v14 }
  0x89   :  { %v57_v18 = vpop.xlane.xlu0 %56 }
  0x8a   :  { %v58_v19 = vmul.f32 0.001953125, %v57_v18 }
  0x8c   :  { %v63_v20 = vperm.slane %v58_v19, %v62_v17 }
  0x8e   :  { %v65_v21 = vsub.f32 %v247_v0, %v63_v20  ;;  %v66_v22 = vsub.f32 %v249_v1, %v63_v20 }
  0x90   :  { %v67_v23 = vmul.f32 %v65_v21, %v65_v21  ;;  %v68_v24 = vmul.f32 %v66_v22, %v66_v22 }
  0x92   :  { %71 = vst [vmem:[#allocation1] ss:$2 sm:$0xff] %v67_v23 }
  0x93   :  { %75 = vst [vmem:[#allocation1 + $0x10] ss:$2 sm:$0xff] %v68_v24 }
  0x99   :  { %v72_v25 = vld.sshfl [vmem:[#allocation1] sm:$0xff pattern:$0x75316420]  ;;  %v73_v26 = vld.sshfl [vmem:[#allocation1 + $0x8] sm:$0xff pattern:$0x75316420] }
  0x9a   :  { %v76_v27 = vld.sshfl [vmem:[#allocation1 + $0x10] sm:$0xff pattern:$0x75316420]  ;;  %v77_v28 = vld.sshfl [vmem:[#allocation1 + $0x18] sm:$0xff pattern:$0x75316420] }
  0x9b   :  { %v82_v29 = vsel %vm46_vm0, %v72_v25, 0.0  ;;  %v83_v30 = vsel %vm46_vm0, %v76_v27, 0.0  ;;  %v85_v31 = vsel %vm46_vm0, %v73_v26, 0.0  ;;  %v86_v32 = vsel %vm46_vm0, %v77_v28, 0.0 }
  0x9c   :  { %v84_v33 = vadd.f32 %v83_v30, %v82_v29  ;;  %v87_v34 = vadd.f32 %v86_v32, %v85_v31 }
  0x9e   :  { %v88_v35 = vsel %vm46_vm0, %v84_v33, 0.0  ;;  %v89_v36 = vsel %vm46_vm0, %v87_v34, 0.0 }
  0x9f   :  { %v90_v37 = vadd.f32 %v89_v36, %v88_v35 }
  0xa1   :  { %91 = vadd.xlane.f32.xlu0 %v90_v37 }
 0x114   :  { %v92_v39 = vpop.xlane.xlu0 %91 }
 0x115   :  { %v93_v40 = vmul.f32 0.001953125, %v92_v39 }
 0x117   :  { %v94_v41 = vadd.f32 1e-05, %v93_v40 }
 0x119   :  { %161 = vrsqrt.f32 %v94_v41  ;;  %vm101_vm2 = vweird.f32 %v94_v41 }
 0x11f   :  { %v162_v42 = vpop.eup %161 }
 0x120   :  { %v96_v43 = vmul.f32 %v162_v42, %v94_v41  ;;  %vm102_vm1 = vweird.f32 %v162_v42 }
 0x121   :  { %vm103_vm3 = vmor %vm101_vm2, %vm102_vm1 }
 0x122   :  { %v97_v44 = vmul.f32 %v162_v42, %v96_v43 }
 0x124   :  { %v98_v45 = vmul.f32 0.5, %v97_v44 }
 0x126   :  { %v99_v46 = vsub.f32 1.5, %v98_v45 }
 0x128   :  { %v100_v47 = vmul.f32 %v162_v42, %v99_v46 }
 0x12a   :  { %v104_v49 = vsel %vm103_vm3, %v162_v42, %v100_v47 }
 0x12b   :  { %v107_v50 = vmul.f32 %v105_v48, %v104_v49 }
 0x12d   :  { %112 = vperm.xlu1 %159, %v107_v50   ;;  %v108_v51 = vmul.f32 %v107_v50, %v58_v19 }
 0x12f   :  { %v109_v53 = vsub.f32 %v106_v52, %v108_v51 }
 0x135   :  { %123 = vperm.xlu1 %159, %v109_v53  }
 0x19f   :  { %v113_v54 = vpop.permute.xlu1 %112 }
 0x1a0   :  { %v117_v55 = vperm.slane %v113_v54, %v62_v17 }
 0x1a2   :  { %v119_v57 = vmul.f32 %v117_v55, %v247_v0  ;;  %v120_v58 = vmul.f32 %v117_v55, %v249_v1 }
 0x1a7   :  { %v124_v56 = vpop.permute.xlu1 %123 }
 0x1a8   :  { %v128_v59 = vperm.slane %v124_v56, %v62_v17 }
 0x1aa   :  { %v130_v60 = vadd.f32 %v128_v59, %v119_v57  ;;  %v131_v61 = vadd.f32 %v128_v59, %v120_v58 }
 0x1ac   :  { %132 = vst [vmem:[#allocation5] sm:$0xff] %v130_v60 }
 0x1ad   :  { %133 = vst [vmem:[#allocation5 + $0x8] sm:$0xff] %v131_v61 }
 0x1ae   :  { %146 = dma.vmem_to_hbm [thread:$0]  %s139_s22, 256, %s141_s25, [#allocation4], %s216_s17, %s216_s17, %s217_s18  }
 0x1af   :  { %213 = dma.done.wait [#allocation4], 256  }
 0x1b0   :  { %214 = vsyncadd [#allocation4], 4294967040 }
 0x1b1   :  { %151 = vsyncpa [#allocation3], 1 }
 0x1b2   :  { %152 = vsyncpa [#allocation4], 1 }

</bundles_post_ra>
